<compile_context>
chip_gen: v7x
topology: tpu7x:2x2x1
jax: 0.10.0
libtpu: 0.0.40
codegen_flags: <defaults>
</compile_context>

<pallas_src>
import functools
import itertools

import numpy as np
import jax
import jax.numpy as jnp
from jax.experimental import pallas as pl
from jax.experimental.pallas import tpu as pltpu


def _round_up(x, m):
    return ((x + m - 1) // m) * m


# ----------------------------- Pallas kernel -----------------------------
def _cost_matrix_kernel(prob_ref, pfeat_ref, onehot_ref, tfeat_ref, cost_ref,
                        *, w_bbox, w_giou):
    # ---- class cost: bf16 MXU matmul of softmax probs with the one-hot
    #      target matrix; (-cost_class) is folded into the one-hot so the
    #      scaling rides the matmul for free; f32 accumulation ----
    cost = jnp.dot(prob_ref[...], onehot_ref[...],
                   preferred_element_type=jnp.float32)             # [TN, TM]

    pf = pfeat_ref[...]        # [TN, 9]  (cx, cy, w, h, x1, y1, x2, y2, area)
    tf = tfeat_ref[...]        # [9, TM]  same features, transposed

    pcx, pcy, pw, ph = pf[:, 0:1], pf[:, 1:2], pf[:, 2:3], pf[:, 3:4]
    px1, py1, px2, py2 = pf[:, 4:5], pf[:, 5:6], pf[:, 6:7], pf[:, 7:8]
    parea = pf[:, 8:9]
    tcx, tcy, tw, th = tf[0:1, :], tf[1:2, :], tf[2:3, :], tf[3:4, :]
    tx1, ty1, tx2, ty2 = tf[4:5, :], tf[5:6, :], tf[6:7, :], tf[7:8, :]
    tarea = tf[8:9, :]

    # ---- pairwise L1 on cxcywh coordinates (torch.cdist p=1) ----
    l1 = (jnp.abs(pcx - tcx) + jnp.abs(pcy - tcy)
          + jnp.abs(pw - tw) + jnp.abs(ph - th))                   # [TN, TM]
    cost = cost + w_bbox * l1

    # ---- pairwise generalized IoU (exact divides: assignments can be
    #      near-tied, so no approx reciprocal) ----
    iw = jnp.maximum(jnp.minimum(px2, tx2) - jnp.maximum(px1, tx1), 0.0)
    ih = jnp.maximum(jnp.minimum(py2, ty2) - jnp.maximum(py1, ty1), 0.0)
    inter = iw * ih
    union = parea + tarea - inter
    iou = inter / union
    # enclosing-box extents are non-negative for valid (x2 >= x1) boxes,
    # so no clamp to zero is needed here.
    ew = jnp.maximum(px2, tx2) - jnp.minimum(px1, tx1)
    eh = jnp.maximum(py2, ty2) - jnp.minimum(py1, ty1)
    earea = ew * eh
    # -giou = (earea - union)/earea - iou
    neg_giou = (earea - union) / earea - iou

    cost_ref[...] = cost + w_giou * neg_giou


# ----------------------------- wrapper -----------------------------
def _pack_box_features(boxes_cxcywh):
    """[K, 4] cxcywh -> [K, 9] = (cx, cy, w, h, x1, y1, x2, y2, area)."""
    cx, cy = boxes_cxcywh[:, 0], boxes_cxcywh[:, 1]
    w, h = boxes_cxcywh[:, 2], boxes_cxcywh[:, 3]
    x1, y1 = cx - 0.5 * w, cy - 0.5 * h
    x2, y2 = cx + 0.5 * w, cy + 0.5 * h
    area = (x2 - x1) * (y2 - y1)
    return jnp.stack([cx, cy, w, h, x1, y1, x2, y2, area], axis=-1)


# dummy (non-degenerate) box feature row used for padding (area == 1).
_DUMMY_FEAT = np.array([0.5, 0.5, 1.0, 1.0, 0.0, 0.0, 1.0, 1.0, 1.0],
                       dtype=np.float32)


def detr_cost_matrix(pred_logits, pred_boxes, tgt_ids, tgt_boxes,
                     cost_class=1.0, cost_bbox=1.0, cost_giou=1.0,
                     tile_n=256, tile_m=512):
    """Returns the [bs, num_queries, total_targets] cost matrix (fp32)."""
    bs, nq, ncls = pred_logits.shape
    N = bs * nq
    M = int(tgt_ids.shape[0])

    # ---- tile / pad sizes: lane-dense output (M, C -> multiples of 128) ----
    C_pad = _round_up(ncls, 128)
    n8 = _round_up(N, 8)
    TILE_N = min(tile_n, n8)
    # aim for >= 2 row tiles so both v7x TensorCores get work (megacore).
    if (n8 // TILE_N) < 2 and TILE_N >= 16:
        TILE_N = _round_up((n8 + 1) // 2, 8)
    N_pad = _round_up(N, TILE_N)

    M128 = _round_up(max(M, 1), 128)
    TILE_M = min(tile_m, M128)
    M_pad = _round_up(M128, TILE_M)

    # ---- softmax hoisted out of the kernel (O(N*C), fused by XLA) ----
    logits = pred_logits.reshape(N, ncls).astype(jnp.float32)
    prob = jax.nn.softmax(logits, axis=-1)                         # [N, C]
    prob = jnp.pad(prob, ((0, N_pad - N), (0, C_pad - ncls)))
    prob = prob.astype(jnp.bfloat16)                               # MXU bf16

    # one-hot target labels with (-cost_class) folded in; padded columns get
    # label -1 -> all-zero one-hot (zero class cost, sliced off anyway).
    ids = jnp.pad(tgt_ids.astype(jnp.int32), (0, M_pad - M),
                  constant_values=-1)
    onehot = (jax.nn.one_hot(ids, C_pad, dtype=jnp.float32)
              * (-float(cost_class))).T.astype(jnp.bfloat16)       # [Cp, Mp]

    # packed per-row / per-column box features; pads use non-degenerate
    # dummy boxes so the exact divides never see a zero denominator.
    pfeat = _pack_box_features(pred_boxes.reshape(N, 4).astype(jnp.float32))
    if N_pad > N:
        pad_p = jnp.tile(jnp.asarray(_DUMMY_FEAT)[None, :], (N_pad - N, 1))
        pfeat = jnp.concatenate([pfeat, pad_p], axis=0)            # [Np, 9]
    tfeat = _pack_box_features(tgt_boxes.astype(jnp.float32))
    if M_pad > M:
        pad_t = jnp.tile(jnp.asarray(_DUMMY_FEAT)[None, :], (M_pad - M, 1))
        tfeat = jnp.concatenate([tfeat, pad_t], axis=0)
    tfeatT = tfeat.T                                               # [9, Mp]

    kernel = functools.partial(_cost_matrix_kernel,
                               w_bbox=float(cost_bbox),
                               w_giou=float(cost_giou))

    n_i = N_pad // TILE_N
    n_j = M_pad // TILE_M
    grid = (n_i, n_j)

    # VMEM budget: double-buffered I/O tiles + ~12 live [TN, TM] f32 temps.
    io_bytes = 2 * (TILE_N * C_pad * 2 + TILE_N * 9 * 4
                    + C_pad * TILE_M * 2 + 9 * TILE_M * 4
                    + TILE_N * TILE_M * 4)
    temp_bytes = 12 * TILE_N * TILE_M * 4
    vmem_limit = int(min(max(io_bytes + temp_bytes + (4 << 20), 32 << 20),
                         48 << 20))

    cost_estimate = pl.CostEstimate(
        flops=int(2 * N_pad * C_pad * M_pad + 40 * N_pad * M_pad),
        transcendentals=int(2 * N_pad * M_pad),        # the two GIoU divides
        bytes_accessed=int(2 * N_pad * C_pad            # prob (once per i)
                           + n_i * 2 * C_pad * M_pad    # onehot per i tile
                           + 4 * N_pad * M_pad          # f32 output
                           + 4 * 9 * (N_pad + n_i * M_pad)),
    )

    C_full = pl.pallas_call(
        kernel,
        out_shape=jax.ShapeDtypeStruct((N_pad, M_pad), jnp.float32),
        grid_spec=pltpu.PrefetchScalarGridSpec(
            num_scalar_prefetch=0,
            grid=grid,
            in_specs=[
                pl.BlockSpec((TILE_N, C_pad), lambda i, j: (i, 0)),
                pl.BlockSpec((TILE_N, 9), lambda i, j: (i, 0)),
                pl.BlockSpec((C_pad, TILE_M), lambda i, j: (0, j)),
                pl.BlockSpec((9, TILE_M), lambda i, j: (0, j)),
            ],
            out_specs=pl.BlockSpec((TILE_N, TILE_M), lambda i, j: (i, j)),
        ),
        compiler_params=pltpu.CompilerParams(
            dimension_semantics=("parallel", "parallel"),
            vmem_limit_bytes=vmem_limit),
        cost_estimate=cost_estimate,
    )(prob, pfeat, onehot, tfeatT)

    # slice off padded rows/columns, reshape back to [bs, nq, M]
    return C_full[:N, :M].reshape(bs, nq, M)


# ------------------------ host-side assignment ------------------------
def _linear_sum_assignment_bruteforce(cost):
    # TODO(synk): linear_sum_assignment (Hungarian algorithm) is a sequential
    # combinatorial solve with no clean Pallas equivalent; solved exactly on
    # host by brute force (only valid for toy sizes).
    nr, nc = cost.shape
    assert nr >= nc
    best_sum, best_rows = None, None
    cols = list(range(nc))
    for rows in itertools.permutations(range(nr), nc):
        s = float(cost[list(rows), cols].sum())
        if best_sum is None or s < best_sum - 1e-12:
            best_sum, best_rows = s, rows
    pairs = sorted(zip(best_rows, cols))
    row_ind = np.asarray([p[0] for p in pairs], dtype=np.int64)
    col_ind = np.asarray([p[1] for p in pairs], dtype=np.int64)
    return row_ind, col_ind


def hungarian_matcher(outputs, targets,
                      cost_class=1.0, cost_bbox=1.0, cost_giou=1.0):
    """JAX/Pallas equivalent of HungarianMatcher.forward."""
    tgt_ids = jnp.concatenate([t["labels"] for t in targets])
    tgt_boxes = jnp.concatenate([t["boxes"] for t in targets])

    C = detr_cost_matrix(outputs["pred_logits"], outputs["pred_boxes"],
                         tgt_ids, tgt_boxes,
                         cost_class=cost_class, cost_bbox=cost_bbox,
                         cost_giou=cost_giou)
    C = np.asarray(jax.block_until_ready(C))

    sizes = [int(t["boxes"].shape[0]) for t in targets]
    indices, off = [], 0
    for i, sz in enumerate(sizes):
        c = C[i, :, off:off + sz]
        indices.append(_linear_sum_assignment_bruteforce(c))
        off += sz
    return indices, C


# ----------------------------- reference -----------------------------
def _ref_cost_matrix(pred_logits, pred_boxes, tgt_ids, tgt_boxes,
                     wc=1.0, wb=1.0, wg=1.0):
    bs, nq, ncls = pred_logits.shape
    prob = jax.nn.softmax(pred_logits.reshape(-1, ncls), axis=-1)
    out_bbox = pred_boxes.reshape(-1, 4)
    cost_class = -prob[:, tgt_ids]
    cost_bbox = jnp.sum(jnp.abs(out_bbox[:, None, :] - tgt_boxes[None, :, :]), -1)

    def to_xyxy(b):
        cx, cy, w, h = b[..., 0], b[..., 1], b[..., 2], b[..., 3]
        return jnp.stack([cx - 0.5 * w, cy - 0.5 * h,
                          cx + 0.5 * w, cy + 0.5 * h], axis=-1)

    b1, b2 = to_xyxy(out_bbox), to_xyxy(tgt_boxes)
    area1 = (b1[:, 2] - b1[:, 0]) * (b1[:, 3] - b1[:, 1])
    area2 = (b2[:, 2] - b2[:, 0]) * (b2[:, 3] - b2[:, 1])
    lt = jnp.maximum(b1[:, None, :2], b2[None, :, :2])
    rb = jnp.minimum(b1[:, None, 2:], b2[None, :, 2:])
    wh = jnp.clip(rb - lt, 0.0)
    inter = wh[..., 0] * wh[..., 1]
    union = area1[:, None] + area2[None, :] - inter
    iou = inter / union
    lt2 = jnp.minimum(b1[:, None, :2], b2[None, :, :2])
    rb2 = jnp.maximum(b1[:, None, 2:], b2[None, :, 2:])
    wh2 = jnp.clip(rb2 - lt2, 0.0)
    earea = wh2[..., 0] * wh2[..., 1]
    giou = iou - (earea - union) / earea
    C = wb * cost_bbox + wc * cost_class + wg * (-giou)
    return C.reshape(bs, nq, -1)


# ------------------------------- main -------------------------------
if __name__ == "__main__":
    key = jax.random.PRNGKey(0)
    bs, num_queries, num_classes = 2, 8, 8
    sizes = [3, 5]   # number of target boxes per batch element

    k1, k2, k3, k4 = jax.random.split(key, 4)

    pred_logits = jax.random.normal(k1, (bs, num_queries, num_classes),
                                    dtype=jnp.float32)
    # cxcywh boxes: centers in [0.25, 0.75], sizes in [0.05, 0.3]
    pc = jax.random.uniform(k2, (bs, num_queries, 2), minval=0.25, maxval=0.75)
    ps = jax.random.uniform(k4, (bs, num_queries, 2), minval=0.05, maxval=0.30)
    pred_boxes = jnp.concatenate([pc, ps], axis=-1).astype(jnp.float32)

    targets = []
    tk = k3
    for i, sz in enumerate(sizes):
        tk, ka, kb, kc = jax.random.split(tk, 4)
        tc = jax.random.uniform(ka, (sz, 2), minval=0.25, maxval=0.75)
        ts = jax.random.uniform(kb, (sz, 2), minval=0.05, maxval=0.30)
        boxes = jnp.concatenate([tc, ts], axis=-1).astype(jnp.float32)
        labels = jax.random.randint(kc, (sz,), 0, num_classes, dtype=jnp.int32)
        targets.append({"labels": labels, "boxes": boxes})

    outputs = {"pred_logits": pred_logits, "pred_boxes": pred_boxes}

    indices, C_kernel = hungarian_matcher(outputs, targets,
                                          cost_class=1.0, cost_bbox=1.0,
                                          cost_giou=1.0)

    # verify the Pallas cost matrix against a pure-JAX reference.
    # Tolerance covers the bf16 MXU operands for the class-cost gather
    # (probabilities are in [0,1], one-hot entries exact); box/GIoU terms
    # use exact f32 divides.
    tgt_ids = jnp.concatenate([t["labels"] for t in targets])
    tgt_boxes = jnp.concatenate([t["boxes"] for t in targets])
    C_ref = np.asarray(_ref_cost_matrix(pred_logits, pred_boxes,
                                        tgt_ids, tgt_boxes))
    np.testing.assert_allclose(C_kernel, C_ref, rtol=1e-2, atol=1e-2)

    # basic sanity on assignment shapes
    for (ri, ci), sz in zip(indices, sizes):
        assert len(ri) == len(ci) == min(num_queries, sz)

    jax.block_until_ready(jnp.asarray(C_kernel))
    print("KERNEL_OK")
</pallas_src>

<mosaic_0001>
module attributes {stable_mosaic.version = 11 : i64} {
  func.func @_cost_matrix_kernel(%arg0: i32, %arg1: i32, %arg2: memref<8x128xbf16, #tpu.memory_space<vmem>>, %arg3: memref<8x9xf32, #tpu.memory_space<vmem>>, %arg4: memref<128x128xbf16, #tpu.memory_space<vmem>>, %arg5: memref<9x128xf32, #tpu.memory_space<vmem>>, %arg6: memref<8x128xf32, #tpu.memory_space<vmem>>) attributes {dimension_semantics = [#tpu.dimension_semantics<parallel>, #tpu.dimension_semantics<parallel>], iteration_bounds = array<i64: 2, 1>, scalar_prefetch = 0 : i64, scratch_operands = 0 : i64, tpu.core_type = #tpu.core_type<tc>, window_params = [{transform_indices = @transform_0, window_bounds = array<i64: 8, 128>}, {transform_indices = @transform_1, window_bounds = array<i64: 8, 9>}, {transform_indices = @transform_2, window_bounds = array<i64: 128, 128>}, {transform_indices = @transform_3, window_bounds = array<i64: 9, 128>}, {transform_indices = @transform_4, window_bounds = array<i64: 8, 128>}]} {
    %c0 = arith.constant 0 : index
    %c0_0 = arith.constant 0 : index
    %0 = vector.load %arg2[%c0, %c0_0] : memref<8x128xbf16, #tpu.memory_space<vmem>>, vector<8x128xbf16>
    %c0_1 = arith.constant 0 : index
    %c0_2 = arith.constant 0 : index
    %1 = vector.load %arg4[%c0_1, %c0_2] : memref<128x128xbf16, #tpu.memory_space<vmem>>, vector<128x128xbf16>
    %cst = arith.constant dense<0.000000e+00> : vector<8x128xf32>
    %2 = tpu.matmul %0, %1, %cst {dimension_numbers = #tpu.dot_dimension_numbers<[1], [0], [0], [1], [0, 0, 1, 1], [], []>} : vector<8x128xbf16>, vector<128x128xbf16>, vector<8x128xf32> -> vector<8x128xf32>
    %c0_3 = arith.constant 0 : index
    %c0_4 = arith.constant 0 : index
    %3 = vector.load %arg3[%c0_3, %c0_4] : memref<8x9xf32, #tpu.memory_space<vmem>>, vector<8x9xf32>
    %c0_5 = arith.constant 0 : index
    %c0_6 = arith.constant 0 : index
    %4 = vector.load %arg5[%c0_5, %c0_6] : memref<9x128xf32, #tpu.memory_space<vmem>>, vector<9x128xf32>
    %5 = vector.extract_strided_slice %3 {offsets = [0, 0], sizes = [8, 1], strides = [1, 1]} : vector<8x9xf32> to vector<8x1xf32>
    %6 = vector.extract_strided_slice %3 {offsets = [0, 1], sizes = [8, 1], strides = [1, 1]} : vector<8x9xf32> to vector<8x1xf32>
    %7 = vector.extract_strided_slice %3 {offsets = [0, 2], sizes = [8, 1], strides = [1, 1]} : vector<8x9xf32> to vector<8x1xf32>
    %8 = vector.extract_strided_slice %3 {offsets = [0, 3], sizes = [8, 1], strides = [1, 1]} : vector<8x9xf32> to vector<8x1xf32>
    %9 = vector.extract_strided_slice %3 {offsets = [0, 4], sizes = [8, 1], strides = [1, 1]} : vector<8x9xf32> to vector<8x1xf32>
    %10 = vector.extract_strided_slice %3 {offsets = [0, 5], sizes = [8, 1], strides = [1, 1]} : vector<8x9xf32> to vector<8x1xf32>
    %11 = vector.extract_strided_slice %3 {offsets = [0, 6], sizes = [8, 1], strides = [1, 1]} : vector<8x9xf32> to vector<8x1xf32>
    %12 = vector.extract_strided_slice %3 {offsets = [0, 7], sizes = [8, 1], strides = [1, 1]} : vector<8x9xf32> to vector<8x1xf32>
    %13 = vector.extract_strided_slice %3 {offsets = [0, 8], sizes = [8, 1], strides = [1, 1]} : vector<8x9xf32> to vector<8x1xf32>
    %14 = vector.extract_strided_slice %4 {offsets = [0, 0], sizes = [1, 128], strides = [1, 1]} : vector<9x128xf32> to vector<1x128xf32>
    %15 = vector.extract_strided_slice %4 {offsets = [1, 0], sizes = [1, 128], strides = [1, 1]} : vector<9x128xf32> to vector<1x128xf32>
    %16 = vector.extract_strided_slice %4 {offsets = [2, 0], sizes = [1, 128], strides = [1, 1]} : vector<9x128xf32> to vector<1x128xf32>
    %17 = vector.extract_strided_slice %4 {offsets = [3, 0], sizes = [1, 128], strides = [1, 1]} : vector<9x128xf32> to vector<1x128xf32>
    %18 = vector.extract_strided_slice %4 {offsets = [4, 0], sizes = [1, 128], strides = [1, 1]} : vector<9x128xf32> to vector<1x128xf32>
    %19 = vector.extract_strided_slice %4 {offsets = [5, 0], sizes = [1, 128], strides = [1, 1]} : vector<9x128xf32> to vector<1x128xf32>
    %20 = vector.extract_strided_slice %4 {offsets = [6, 0], sizes = [1, 128], strides = [1, 1]} : vector<9x128xf32> to vector<1x128xf32>
    %21 = vector.extract_strided_slice %4 {offsets = [7, 0], sizes = [1, 128], strides = [1, 1]} : vector<9x128xf32> to vector<1x128xf32>
    %22 = vector.extract_strided_slice %4 {offsets = [8, 0], sizes = [1, 128], strides = [1, 1]} : vector<9x128xf32> to vector<1x128xf32>
    %23 = vector.broadcast %5 : vector<8x1xf32> to vector<8x128xf32>
    %24 = vector.broadcast %14 : vector<1x128xf32> to vector<8x128xf32>
    %25 = arith.subf %23, %24 : vector<8x128xf32>
    %26 = math.absf %25 : vector<8x128xf32>
    %27 = vector.broadcast %6 : vector<8x1xf32> to vector<8x128xf32>
    %28 = vector.broadcast %15 : vector<1x128xf32> to vector<8x128xf32>
    %29 = arith.subf %27, %28 : vector<8x128xf32>
    %30 = math.absf %29 : vector<8x128xf32>
    %31 = arith.addf %26, %30 : vector<8x128xf32>
    %32 = vector.broadcast %7 : vector<8x1xf32> to vector<8x128xf32>
    %33 = vector.broadcast %16 : vector<1x128xf32> to vector<8x128xf32>
    %34 = arith.subf %32, %33 : vector<8x128xf32>
    %35 = math.absf %34 : vector<8x128xf32>
    %36 = arith.addf %31, %35 : vector<8x128xf32>
    %37 = vector.broadcast %8 : vector<8x1xf32> to vector<8x128xf32>
    %38 = vector.broadcast %17 : vector<1x128xf32> to vector<8x128xf32>
    %39 = arith.subf %37, %38 : vector<8x128xf32>
    %40 = math.absf %39 : vector<8x128xf32>
    %41 = arith.addf %36, %40 : vector<8x128xf32>
    %cst_7 = arith.constant 1.000000e+00 : f32
    %42 = vector.broadcast %cst_7 : f32 to vector<8x128xf32>
    %43 = arith.mulf %42, %41 : vector<8x128xf32>
    %44 = arith.addf %2, %43 : vector<8x128xf32>
    %45 = vector.broadcast %11 : vector<8x1xf32> to vector<8x128xf32>
    %46 = vector.broadcast %20 : vector<1x128xf32> to vector<8x128xf32>
    %47 = arith.minimumf %45, %46 : vector<8x128xf32>
    %48 = vector.broadcast %9 : vector<8x1xf32> to vector<8x128xf32>
    %49 = vector.broadcast %18 : vector<1x128xf32> to vector<8x128xf32>
    %50 = arith.maximumf %48, %49 : vector<8x128xf32>
    %51 = arith.subf %47, %50 : vector<8x128xf32>
    %cst_8 = arith.constant 0.000000e+00 : f32
    %52 = vector.broadcast %cst_8 : f32 to vector<8x128xf32>
    %53 = arith.maximumf %51, %52 : vector<8x128xf32>
    %54 = vector.broadcast %12 : vector<8x1xf32> to vector<8x128xf32>
    %55 = vector.broadcast %21 : vector<1x128xf32> to vector<8x128xf32>
    %56 = arith.minimumf %54, %55 : vector<8x128xf32>
    %57 = vector.broadcast %10 : vector<8x1xf32> to vector<8x128xf32>
    %58 = vector.broadcast %19 : vector<1x128xf32> to vector<8x128xf32>
    %59 = arith.maximumf %57, %58 : vector<8x128xf32>
    %60 = arith.subf %56, %59 : vector<8x128xf32>
    %cst_9 = arith.constant 0.000000e+00 : f32
    %61 = vector.broadcast %cst_9 : f32 to vector<8x128xf32>
    %62 = arith.maximumf %60, %61 : vector<8x128xf32>
    %63 = arith.mulf %53, %62 : vector<8x128xf32>
    %64 = vector.broadcast %13 : vector<8x1xf32> to vector<8x128xf32>
    %65 = vector.broadcast %22 : vector<1x128xf32> to vector<8x128xf32>
    %66 = arith.addf %64, %65 : vector<8x128xf32>
    %67 = arith.subf %66, %63 : vector<8x128xf32>
    %68 = arith.divf %63, %67 : vector<8x128xf32>
    %69 = vector.broadcast %11 : vector<8x1xf32> to vector<8x128xf32>
    %70 = vector.broadcast %20 : vector<1x128xf32> to vector<8x128xf32>
    %71 = arith.maximumf %69, %70 : vector<8x128xf32>
    %72 = vector.broadcast %9 : vector<8x1xf32> to vector<8x128xf32>
    %73 = vector.broadcast %18 : vector<1x128xf32> to vector<8x128xf32>
    %74 = arith.minimumf %72, %73 : vector<8x128xf32>
    %75 = arith.subf %71, %74 : vector<8x128xf32>
    %76 = vector.broadcast %12 : vector<8x1xf32> to vector<8x128xf32>
    %77 = vector.broadcast %21 : vector<1x128xf32> to vector<8x128xf32>
    %78 = arith.maximumf %76, %77 : vector<8x128xf32>
    %79 = vector.broadcast %10 : vector<8x1xf32> to vector<8x128xf32>
    %80 = vector.broadcast %19 : vector<1x128xf32> to vector<8x128xf32>
    %81 = arith.minimumf %79, %80 : vector<8x128xf32>
    %82 = arith.subf %78, %81 : vector<8x128xf32>
    %83 = arith.mulf %75, %82 : vector<8x128xf32>
    %84 = arith.subf %83, %67 : vector<8x128xf32>
    %85 = arith.divf %84, %83 : vector<8x128xf32>
    %86 = arith.subf %85, %68 : vector<8x128xf32>
    %cst_10 = arith.constant 1.000000e+00 : f32
    %87 = vector.broadcast %cst_10 : f32 to vector<8x128xf32>
    %88 = arith.mulf %87, %86 : vector<8x128xf32>
    %89 = arith.addf %44, %88 : vector<8x128xf32>
    %c0_11 = arith.constant 0 : index
    %c0_12 = arith.constant 0 : index
    %90 = vector.load %arg6[%c0_11, %c0_12] : memref<8x128xf32, #tpu.memory_space<vmem>>, vector<8x128xf32>
    tpu.vector_store %arg6[%c0_11, %c0_12], %89 {strides = array<i32>} : memref<8x128xf32, #tpu.memory_space<vmem>>, vector<8x128xf32>,
    return
  }
  func.func @transform_0(%arg0: i32, %arg1: i32) -> (i32, i32) {
    %c0_i32 = arith.constant 0 : i32
    %c0_i32_0 = arith.constant 0 : i32
    return %arg0, %c0_i32 : i32, i32
  }
  func.func @transform_1(%arg0: i32, %arg1: i32) -> (i32, i32) {
    %c0_i32 = arith.constant 0 : i32
    %c0_i32_0 = arith.constant 0 : i32
    return %arg0, %c0_i32 : i32, i32
  }
  func.func @transform_2(%arg0: i32, %arg1: i32) -> (i32, i32) {
    %c0_i32 = arith.constant 0 : i32
    %c0_i32_0 = arith.constant 0 : i32
    return %c0_i32, %arg1 : i32, i32
  }
  func.func @transform_3(%arg0: i32, %arg1: i32) -> (i32, i32) {
    %c0_i32 = arith.constant 0 : i32
    %c0_i32_0 = arith.constant 0 : i32
    return %c0_i32, %arg1 : i32, i32
  }
  func.func @transform_4(%arg0: i32, %arg1: i32) -> (i32, i32) {
    %c0_i32 = arith.constant 0 : i32
    return %arg0, %arg1 : i32, i32
  }
}

</mosaic_0001>

<bundles_post_ra>
// kernel: tpu_custom_call.1
= control target key start
LH: loop header
LB: loop body
LE: loop exit
PB: predicated region body
PF: predicated region fallthrough
CT: control target
= control target key end

     0   :  { %s1402_s0 = inlined_call_operand.hbm [shape: bf16[16,128], index: 0, kind: input, shape index: {}]   ;;  %s1403_s1 = inlined_call_operand.hbm [shape: f32[16,9], index: 1, kind: input, shape index: {}]   ;;  %s1404_s2 = inlined_call_operand.hbm [shape: bf16[128,128], index: 2, kind: input, shape index: {}]   ;;  %s1405_s3 = inlined_call_operand.hbm [shape: f32[9,128], index: 3, kind: input, shape index: {}]   ;;  %s1406_s4 = inlined_call_operand.hbm [shape: f32[16,128], index: 4, kind: output, shape index: {}]  }
   0x1   :  { %1411 = sst [smem:[#allocation16_spill]] %s1402_s0 }
   0x2   :  { %1412 = sst [smem:[#allocation17_spill]] %s1404_s2 }
   0x3   :  { %9 = vsyncpa [#allocation3], 0 }
   0x4   :  { %11 = vsyncpa [#allocation3 + $0x1], 0 }
   0x5   :  { %12 = vsyncpa [#allocation6], 0 }
   0x6   :  { %14 = vsyncpa [#allocation6 + $0x1], 0 }
   0x7   :  { %15 = vsyncpa [#allocation9], 0 }
   0x8   :  { %16 = vsyncpa [#allocation4], 0 }
   0x9   :  { %18 = vsyncpa [#allocation4 + $0x1], 0  ;;  %s1106_s15 = smov 0   ;;  %s1108_s16 = smov 0  }
   0xa   :  { %s1110_s17 = smov 0   ;;  %s1112_s18 = smov 0  }
   0xb   :  { %s1114_s19 = smov 0   ;;  %s1116_s20 = smov 0  }
   0xc LB: > { %s1137_s21 = sadd.s32 4294967295, %s1059_s20   ;;  %s667_s22 = sadd.s32 4294967294, %s1059_s20   ;;  %s1059_s20 = sphi %s1116_s20, %s24_s20   ;;  %s1055_s19 = sphi %s1114_s19, %s1436_s19   ;;  %s1051_s18 = sphi %s1112_s18, %s1435_s18   ;;  %s1047_s17 = sphi %s1110_s17, %s1434_s17   ;;  %s1043_s16 = sphi %s1108_s16, %s1433_s16   ;;  %s1039_s15 = sphi %s1106_s15, %s1432_s15  }
   0xd   : > { %p56_p0 = scmp.ne.s32.totalorder %s1043_s16, %s1039_s15  ;;  %p1407_p1 = scmp.eq.s32.totalorder %s1137_s21, 0 }
   0xe   : > { %p166_p3 = scmp.eq.s32.totalorder %s667_s22, 1  ;;  %p668_p5 = scmp.ge.s32.totalorder %s1059_s20, 1 }
   0xf   : > { %p1146_p4 = por %p1407_p1, %p56_p0  ;;  %p173_p7 = scmp.lt.s32.totalorder %s1059_s20, 3 }
  0x10   : > { %p1151_p6 = por %p166_p3, %p56_p0  ;;  %s1061_s26 = smov [#allocation7]  }
  0x11   : > { %s1413_s23 = scalar_select %p1146_p4, 1, 0 }
  0x12   : > { %s1414_s24 = scalar_select %p1151_p6, 1, 0 }
  0x13   : > { %p1156_p8 = pnand %p668_p5, %p173_p7  ;;  %s187_s27 = sshll.u32 %s1061_s26, 4  ;;  %s1160_s27 = int_to_ptr.vmem [resolvable:$true] %s187_s27 }
  0x14   : > { %s1062_s29 = smov [#allocation8]   ;;  %s1417_s2 = sld [smem:[#allocation17_spill]] }
  0x15   : > { %s1415_s25 = scalar_select %p1156_p8, 1, 0 }
  0x16   : > { %p738_p9 = pneg %p1156_p8  ;;  %s202_s30 = sshll.u32 %s1062_s29, 4  ;;  %s1171_s30 = int_to_ptr.vmem [resolvable:$true] %s202_s30 }
  0x18   : > { %p1167_p11 = pnand %p738_p9, %p1407_p1 }
  0x1a   : > { %s849_s7 = scalar_lea.hbm %s1417_s2, 1024  ;;  %p851_p13 = pneg %p1167_p11 }
  0x1b   : > { %p850_p12 = scmp.ne.s32.totalorder %s1417_s2, %s849_s7  ;;  %p856_p5 = scmp.lt.u32.totalorder %s849_s7, %s1417_s2 }
  0x1d   : > { %p852_p0 = pnand %p851_p13, %p850_p12 }
  0x1f   : > { %p853_p3 = pneg %p852_p0 }
  0x21   : > { %p858_p7 = pnand %p856_p5, %p853_p3 }
  0x23   : > { %861 = shalt.err (!%p858_p7)
}
  0x24   : > { %s862_s12 = scalar_lea.vmem %s1160_s27, 1024  ;;  %p870_p2 = scmp.lt.s32.totalorder %s1160_s27, %s1160_s27 }
  0x25   : > { %p863_p9 = scmp.ne.s32.totalorder %s1160_s27, %s862_s12  ;;  %p871_p12 = scmp.lt.s32.totalorder %s862_s12, %s862_s12 }
  0x27   : > { %p865_p10 = pnand %p863_p9, %p851_p13  ;;  %p872_p0 = por %p871_p12, %p870_p2 }
  0x29   : > { %p866_p1 = pneg %p865_p10 }
  0x2b   : > { %p873_p6 = pnand %p872_p0, %p866_p1 }
  0x2d   : > { %876 = shalt.err (!%p873_p6)
}
  0x2e   : > { %s1063_s13 = smov 64   ;;  %s1064_s14 = smov 4  }
  0x2f   : > { %741 = dma.hbm_to_vmem [thread:$0]  (!%p1167_p11), %s1417_s2, 1024, %s1160_s27, [#allocation6], %s1063_s13, %s1063_s13, %s1064_s14  }
  0x30   : > { %s877_s6 = scalar_lea.hbm %s1405_s3, 256 }
  0x31   : > { %p878_p2 = scmp.ne.s32.totalorder %s1405_s3, %s877_s6  ;;  %p884_p10 = scmp.lt.u32.totalorder %s877_s6, %s1405_s3 }
  0x33   : > { %p880_p1 = pnand %p878_p2, %p851_p13 }
  0x35   : > { %p881_p6 = pneg %p880_p1 }
  0x37   : > { %p886_p3 = pnand %p884_p10, %p881_p6 }
  0x39   : > { %889 = shalt.err (!%p886_p3)
}
  0x3a   : > { %s890_s27 = scalar_lea.vmem %s1171_s30, 256  ;;  %p898_p12 = scmp.lt.s32.totalorder %s1171_s30, %s1171_s30 }
  0x3b   : > { %p891_p5 = scmp.ne.s32.totalorder %s1171_s30, %s890_s27  ;;  %p899_p0 = scmp.lt.s32.totalorder %s890_s27, %s890_s27 }
  0x3d   : > { %p893_p7 = pnand %p891_p5, %p851_p13  ;;  %p900_p2 = por %p899_p0, %p898_p12 }
  0x3f   : > { %p894_p9 = pneg %p893_p7 }
  0x41   : > { %p901_p1 = pnand %p900_p2, %p894_p9 }
  0x43   : > { %904 = shalt.err (!%p901_p1)
}
  0x44   : > { %s1065_s11 = smov 128   ;;  %s1066_s12 = smov 8  }
  0x45   : > { %744 = dma.hbm_to_vmem [thread:$0]  (!%p1167_p11), %s1405_s3, 256, %s1171_s30, [#allocation9], %s1065_s11, %s1065_s11, %s1066_s12  }
  0x46   : > { %s36_s22 = sadd.s32 1, %s1055_s19  ;;  %s43_s26 = sadd.s32 1, %s1047_s17 }
  0x47   : > { %p38_p13 = scmp.ge.s32.totalorder %s36_s22, 2  ;;  %p50_p6 = scmp.ne.s32.totalorder %s1047_s17, %s1043_s16 }
  0x48   : > { %p51_p10 = scmp.eq.s32.totalorder %s1059_s20, 0  ;;  %p758_p3 = scmp.lt.s32.totalorder %s1059_s20, 2 }
  0x49   : > { %s1438_s22 = smov (%p38_p13, %s36_s22), 0  ;;  %p1418_p7 = scmp.eq.s32.totalorder %s1137_s21, 1 }
  0x4a   : > { %p52_p5 = por %p51_p10, %p50_p6  ;;  %s40_s29 = ssub.s32 %s1055_s19, %s1438_s22 }
  0x4b   : > { %p1235_p9 = por %p1418_p7, %p50_p6  ;;  %s1242_s5 = sand.u32 1, %s1047_s17  }
  0x4c   : > { %p41_p11 = scmp.eq.s32.totalorder %s40_s29, 0  ;;  %s672_s30 = sshll.u32 %s1242_s5, 2 }
  0x4d   : > { %s1419_s28 = scalar_select %p1235_p9, 1, 0 }
  0x4e   : > { %s673_s6 = sshll.u32 %s1055_s19, 6  ;;  %s1420_s0 = sld [smem:[#allocation16_spill]] }
  0x4f   : > { %s1247_s7 = scalar_select %p41_p11, %s1047_s17, %s43_s26  }
  0x50   : > { %s220_s27 = scalar_lea.vmem [#allocation2], %s672_s30  ;;  %p1256_p12 = pnand %p758_p3, %p52_p5 }
  0x51   : > { %s227_s11 = sshll.u32 %s220_s27, 4  ;;  %s217_s14 = scalar_lea.sflag [#allocation3], %s1242_s5  ;;  %s1260_s11 = int_to_ptr.vmem [resolvable:$true] %s227_s11 }
  0x52   : > { %p907_p2 = pneg %p1256_p12 }
  0x54   : > { %s1252_s10 = scalar_lea.hbm %s1420_s0, %s673_s6  ;;  %s910_s6 = scalar_lea.hbm %s1420_s0, 128 }
  0x55   : > { %s905_s26 = scalar_lea.hbm %s1252_s10, 64  ;;  %p911_p6 = scmp.lt.u32.totalorder %s1252_s10, %s1420_s0 }
  0x56   : > { %p906_p0 = scmp.ne.s32.totalorder %s1252_s10, %s905_s26  ;;  %p912_p10 = scmp.lt.u32.totalorder %s910_s6, %s905_s26 }
  0x57   : > { %p914_p5 = scmp.lt.u32.totalorder %s905_s26, %s1252_s10 }
  0x58   : > { %p908_p1 = pnand %p907_p2, %p906_p0  ;;  %p913_p3 = por %p912_p10, %p911_p6 }
  0x5a   : > { %p909_p13 = pneg %p908_p1  ;;  %p915_p7 = por %p914_p5, %p913_p3 }
  0x5c   : > { %p916_p11 = pnand %p915_p7, %p909_p13 }
  0x5e   : > { %919 = shalt.err (!%p916_p11)
}
  0x5f   : > { %s920_s27 = scalar_lea.vmem %s1260_s11, 64  ;;  %s1067_s29 = smov [#allocation2]  }
  0x60   : > { %p921_p0 = scmp.ne.s32.totalorder %s1260_s11, %s920_s27  ;;  %s925_s30 = sshll.u32 %s1067_s29, 4  ;;  %s926_s30 = int_to_ptr.vmem [resolvable:$false] %s925_s30 }
  0x61   : > { %s927_s8 = scalar_lea.vmem %s926_s30, 128  ;;  %p928_p4 = scmp.lt.s32.totalorder %s1260_s11, %s926_s30 }
  0x62   : > { %p923_p1 = pnand %p921_p0, %p907_p2  ;;  %p929_p6 = scmp.lt.s32.totalorder %s927_s8, %s920_s27 }
  0x64   : > { %p924_p9 = pneg %p923_p1  ;;  %p930_p10 = por %p929_p6, %p928_p4 }
  0x66   : > { %p931_p3 = pnand %p930_p10, %p924_p9 }
  0x68   : > { %934 = shalt.err (!%p931_p3)
}
  0x69   : > { %748 = dma.hbm_to_vmem [thread:$0]  (!%p1256_p12), %s1252_s10, 64, %s1260_s11, %s217_s14  }
  0x6a   : > { %s674_s26 = sshll.u32 %s1242_s5, 3  ;;  %s675_s6 = sshll.u32 %s1055_s19, 7 }
  0x6b   : > { %s1294_s13 = scalar_lea.hbm %s1403_s1, %s675_s6  ;;  %s238_s27 = scalar_lea.vmem [#allocation5], %s674_s26 }
  0x6c   : > { %s245_s30 = sshll.u32 %s238_s27, 4  ;;  %s1422_s8 = sand.u32 1, %s1059_s20   ;;  %s246_s30 = int_to_ptr.vmem [resolvable:$true] %s245_s30 }
  0x6d   : > { %s235_s0 = scalar_lea.sflag [#allocation6], %s1422_s8  ;;  %s935_s2 = scalar_lea.hbm %s1294_s13, 128 }
  0x6e   : > { %p936_p4 = scmp.ne.s32.totalorder %s1294_s13, %s935_s2  ;;  %s940_s11 = scalar_lea.hbm %s1403_s1, 256 }
  0x6f   : > { %p941_p5 = scmp.lt.u32.totalorder %s1294_s13, %s1403_s1  ;;  %p942_p7 = scmp.lt.u32.totalorder %s940_s11, %s935_s2 }
  0x70   : > { %p938_p9 = pnand %p936_p4, %p907_p2  ;;  %p944_p0 = scmp.lt.u32.totalorder %s935_s2, %s1294_s13 }
  0x71   : > { %p943_p11 = por %p942_p7, %p941_p5 }
  0x72   : > { %p939_p13 = pneg %p938_p9 }
  0x73   : > { %p945_p1 = por %p944_p0, %p943_p11 }
  0x75   : > { %p946_p6 = pnand %p945_p1, %p939_p13 }
  0x77   : > { %949 = shalt.err (!%p946_p6)
}
  0x78   : > { %s950_s26 = scalar_lea.vmem %s246_s30, 128  ;;  %s1068_s9 = smov [#allocation5]  }
  0x79   : > { %p951_p10 = scmp.ne.s32.totalorder %s246_s30, %s950_s26  ;;  %s955_s29 = sshll.u32 %s1068_s9, 4  ;;  %s956_s29 = int_to_ptr.vmem [resolvable:$false] %s955_s29 }
  0x7a   : > { %s957_s27 = scalar_lea.vmem %s956_s29, 256  ;;  %p958_p9 = scmp.lt.s32.totalorder %s246_s30, %s956_s29 }
  0x7b   : > { %p953_p3 = pnand %p951_p10, %p907_p2  ;;  %p959_p8 = scmp.lt.s32.totalorder %s957_s27, %s950_s26 }
  0x7d   : > { %p954_p4 = pneg %p953_p3  ;;  %p960_p5 = por %p959_p8, %p958_p9 }
  0x7f   : > { %p961_p7 = pnand %p960_p5, %p954_p4 }
  0x81   : > { %964 = shalt.err (!%p961_p7)
}
  0x82   : > { %751 = dma.hbm_to_vmem [thread:$0]  (!%p1256_p12), %s1294_s13, 128, %s246_s30, %s235_s0  }
  0x83   : > { %p1423_p13 = scmp.ne.s32.totalorder %s1415_s25, 0 }
  0x84   : > { %s1320_s2 = sand.u32 (!%p1423_p13), 1, %s1043_s16   ;;  %p1424_p8 = scmp.ne.s32.totalorder (!%p1423_p13), %s1413_s23, 0 }
  0x85   : > { %254 = sbr.rel (%p1423_p13) target bundleno = 415 (0x19f), region = 36  ;;  %s677_s8 = sshll.u32 (!%p1423_p13), %s1320_s2, 2 }
  0x86   : > { %s257_s5 = scalar_lea.sflag (!%p1423_p13), [#allocation3], %s1320_s2  ;;  %s1324_s10 = scalar_lea.vmem (!%p1423_p13), [#allocation2], %s677_s8 }
  0x8c   : > { %1018 = dma.done.wait (%p1424_p8), %s257_s5, 64  }
  0x8d   : > { %1020 = vsyncadd (%p1424_p8), %s257_s5, 4294967232  ;;  %s265_s0 = sand.u32 1, %s1137_s21   ;;  %s678_s25 = sshll.u32 %s1320_s2, 3 }
  0x8e   : > { %s266_s12 = scalar_lea.sflag [#allocation6], %s265_s0  ;;  %s269_s13 = scalar_lea.vmem [#allocation5], %s678_s25 }
  0x8f   : > { %1022 = dma.done.wait (%p1424_p8), %s266_s12, 128  }
  0x90   : > { %1024 = vsyncadd (%p1424_p8), %s266_s12, 4294967168  ;;  %p1425_p12 = scmp.eq.s32.totalorder %s1137_s21, 0 }
  0x92   : > { %1026 = dma.done.wait (%p1425_p12), [#allocation6], 1024   ;;  %p1426_p2 = pmov %p1425_p12 }
  0x94   : > { %1028 = vsyncadd (%p1426_p2), [#allocation6], 4294966272  ;;  %p1427_p11 = pmov %p1426_p2 }
  0x95   : > { %p1428_p0 = pmov %p1426_p2 }
  0x96   : > { %1030 = dma.done.wait (%p1427_p11), [#allocation9], 256  }
  0x97   : > { %1032 = vsyncadd (%p1428_p0), [#allocation9], 4294967040  ;;  %v1069_v0 = vmov 0.0   ;;  %vm1070_vm0 = vmmov 0   ;;  %v1071_v1 = vmov 7   ;;  %v1072_v2 = vmov 6  }
  0x98   : > { %704 = vmatprep.subr.bf16.mxu0 %v1069_v0  ;;  %720 = vmatprep.mubr.msk.bf16.mxu0 %vm1070_vm0, %v1069_v0  ;;  %v837_v3 = vld [vmem:[#allocation7] sm:$0xff]   ;;  %v838_v4 = vld [vmem:[#allocation7 + $0x8] sm:$0xff]   ;;  %v839_v5 = vld [vmem:[#allocation7 + $0x10] sm:$0xff]   ;;  %v1073_v8 = vmov 5   ;;  %v1074_v9 = vmov 4   ;;  %v1075_v12 = vmov 8   ;;  %v333_v20 = vlaneseq }
  0x99   : > { %829 = vset.pattern.permute.xlu1 %v1071_v1  ;;  %827 = vset.pattern.permute.xlu0 %v1072_v2  ;;  %v325_v6 = vld [vmem:[%s269_s13] sm:$0xff]  ;;  %v841_v10 = vld [vmem:[#allocation7 + $0x20] sm:$0xff]   ;;  %v842_v11 = vld [vmem:[#allocation7 + $0x28] sm:$0xff]   ;;  %v1076_v13 = vmov 0   ;;  %v1077_v15 = vmov 1   ;;  %v1078_v16 = vmov 3  }
  0x9a   : > { %705 = vmatpush3.bf16.msra.mxu0 %v837_v3  ;;  %481 = vperm.xlu1 %829, %v325_v6   ;;  %v840_v7 = vld [vmem:[#allocation7 + $0x18] sm:$0xff]   ;;  %v843_v14 = vld [vmem:[#allocation7 + $0x30] sm:$0xff]   ;;  %v1079_v18 = vmov 2   ;;  %v308_v19 = vld [vmem:[%s1324_s10] sm:$0xf]  ;;  %v334_v21 = vshrl.u32 %v333_v20, 7 }
  0x9b   : > { %706 = vmatprep.subr.bf16.mxu0 %v1069_v0  ;;  %461 = vperm.xlu0 %827, %v325_v6   ;;  %v844_v17 = vld [vmem:[#allocation7 + $0x38] sm:$0xff]   ;;  %v326_v28 = vld [vmem:[#allocation8] sm:$0xff]  ;;  %v690_v47 = vld [vmem:[#allocation8 + $0x8] ss:$0 sm:$0xff]  ;;  %s692_s21 = sshll.u32 %s1051_s18, 7  ;;  %s306_s23 = scalar_lea.vmem [#allocation10], %s678_s25 }
  0x9c   : > { %v486_v24 = vsub.s32 7, %v334_v21  ;;  %v466_v25 = vsub.s32 6, %v334_v21  ;;  %v495_v26 = vsub.s32 5, %v334_v21  ;;  %v475_v27 = vsub.s32 4, %v334_v21  ;;  %s541_s30 = sshll.u32 %s306_s23, 4  ;;  %s1353_s6 = scalar_lea.hbm %s1406_s4, %s692_s21  ;;  %s1355_s30 = int_to_ptr.vmem [resolvable:$true] %s541_s30 }
  0x9d   : > { %v345_v51 = vsub.s32 1, %v334_v21  ;;  %v335_v52 = vsub.s32 0, %v334_v21  ;;  %v356_v56 = vsub.s32 2, %v334_v21  ;;  %v367_v1 = vsub.s32 3, %v334_v21  ;;  %s527_s18 = scalar_lea.sflag [#allocation4], %s1320_s2  ;;  %s965_s26 = scalar_lea.vmem %s1355_s30, 128 }
  0x9e   : > { %707 = vmatpush3.bf16.msra.mxu0 %v838_v4  ;;  %830 = vset.pattern.permute.xlu1 %v1073_v8  ;;  %v487_v29 = vrot.slane %v326_v28, %v486_v24  ;;  %v467_v30 = vrot.slane %v326_v28, %v466_v25  ;;  %v496_v31 = vrot.slane %v326_v28, %v495_v26  ;;  %p966_p1 = scmp.ne.s32.totalorder %s1355_s30, %s965_s26  ;;  %p1429_p6 = scmp.ne.s32.totalorder %s1419_s28, 0 }
  0x9f   : > { %708 = vmatprep.subr.bf16.mxu0 %v1069_v0  ;;  %828 = vset.pattern.permute.xlu0 %v1074_v9  ;;  %v476_v32 = vrot.slane %v326_v28, %v475_v27  ;;  %v346_v58 = vrot.slane %v326_v28, %v345_v51  ;;  %v336_v59 = vrot.slane %v326_v28, %v335_v52  ;;  %s1080_s9 = smov [#allocation10]  }
  0xa0   : > { %490 = vperm.xlu1 %830, %v325_v6   ;;  %470 = vperm.xlu0 %828, %v325_v6   ;;  %v357_v62 = vrot.slane %v326_v28, %v356_v56  ;;  %p967_p10 = pnand %p966_p1, %p1429_p6  ;;  %s969_s29 = sshll.u32 %s1080_s9, 4  ;;  %s970_s29 = int_to_ptr.vmem [resolvable:$false] %s969_s29 }
  0xa1   : > { %s971_s27 = scalar_lea.vmem %s970_s29, 256  ;;  %p972_p4 = scmp.lt.s32.totalorder %s1355_s30, %s970_s29 }
  0xa2   : > { %709 = vmatpush3.bf16.msra.mxu0 %v839_v5  ;;  %p968_p3 = pneg %p967_p10  ;;  %p973_p9 = scmp.lt.s32.totalorder %s971_s27, %s965_s26 }
  0xa3   : > { %710 = vmatprep.subr.bf16.mxu0 %v1069_v0 }
  0xa4   : > { %831 = vset.pattern.permute.xlu1 %v1075_v12  ;;  %832 = vset.pattern.permute.xlu0 %v1076_v13  ;;  %p974_p5 = por %p973_p9, %p972_p4 }
  0xa5   : > { %502 = vperm.xlu1 %831, %v325_v6   ;;  %330 = vperm.xlu0 %832, %v325_v6  }
  0xa6   : > { %711 = vmatpush3.bf16.msra.mxu0 %v840_v7  ;;  %p975_p7 = pnand %p974_p5, %p968_p3 }
  0xa7   : > { %712 = vmatprep.subr.bf16.mxu0 %v1069_v0 }
  0xa9   : > { %833 = vset.pattern.permute.xlu1 %v1077_v15  ;;  %835 = vset.pattern.permute.xlu0 %v1078_v16 }
  0xaa   : > { %713 = vmatpush3.bf16.msra.mxu0 %v841_v10  ;;  %340 = vperm.xlu1 %833, %v325_v6  }
  0xab   : > { %714 = vmatprep.subr.bf16.mxu0 %v1069_v0  ;;  %362 = vperm.xlu0 %835, %v325_v6  }
  0xae   : > { %715 = vmatpush3.bf16.msra.mxu0 %v842_v11  ;;  %834 = vset.pattern.permute.xlu1 %v1079_v18 }
  0xaf   : > { %716 = vmatprep.subr.bf16.mxu0 %v1069_v0  ;;  %351 = vperm.xlu1 %834, %v325_v6   ;;  %v368_v6 = vrot.slane %v326_v28, %v367_v1 }
  0xb0   : > { %836 = vset.pattern.permute.xlu0 %v1075_v12 }
  0xb2   : > { %717 = vmatpush3.bf16.msra.mxu0 %v843_v14 }
  0xb3   : > { %718 = vmatprep.subr.bf16.mxu0 %v1069_v0 }
  0xb6   : > { %719 = vmatpush3.bf16.msra.mxu0 %v844_v17 }
  0xb9   : > { %721 = vmatmul.mubr.bf16.vlgmr.msra.gmra.mrb[0].mxu0 %v308_v19 }
 0x119   : > { %v482_v22 = vpop.permute.xlu1 %481 }
 0x11a   : > { %v462_v23 = vpop.permute.xlu0 %461  ;;  %v488_v35 = vmin.f32 %v482_v22, %v487_v29  ;;  %v516_v41 = vmax.f32 %v482_v22, %v487_v29 }
 0x11b   : > { %v468_v36 = vmin.f32 %v462_v23, %v467_v30  ;;  %v513_v42 = vmax.f32 %v462_v23, %v467_v30 }
 0x11f   : > { %v491_v33 = vpop.permute.xlu1 %490  ;;  %v471_v34 = vpop.permute.xlu0 %470 }
 0x120   : > { %v497_v37 = vmax.f32 %v491_v33, %v496_v31  ;;  %v477_v38 = vmax.f32 %v471_v34, %v476_v32  ;;  %v517_v43 = vmin.f32 %v491_v33, %v496_v31  ;;  %v514_v44 = vmin.f32 %v471_v34, %v476_v32 }
 0x122   : > { %v498_v39 = vsub.f32 %v488_v35, %v497_v37  ;;  %v478_v40 = vsub.f32 %v468_v36, %v477_v38  ;;  %v518_v49 = vsub.f32 %v516_v41, %v517_v43  ;;  %v515_v50 = vsub.f32 %v513_v42, %v514_v44 }
 0x124   : > { %v499_v45 = vmax.f32 %v498_v39, 0.0  ;;  %v479_v46 = vmax.f32 %v478_v40, 0.0  ;;  %v503_v48 = vpop.permute.xlu1 %502  ;;  %v519_v57 = vmul.f32 %v518_v49, %v515_v50  ;;  %v331_v61 = vpop.permute.xlu0 %330 }
 0x125   : > { %v509_v54 = vadd.f32 %v690_v47, %v503_v48  ;;  %v337_v0 = vsub.f32 %v331_v61, %v336_v59 }
 0x126   : > { %v500_v53 = vmul.f32 %v499_v45, %v479_v46  ;;  %845 = vrcp.f32 %v519_v57 }
 0x127   : > { %v338_v4 = vand.u32 2147483647, %v337_v0 }
 0x128   : > { %v510_v60 = vsub.f32 %v509_v54, %v500_v53 }
 0x129   : > { %v341_v55 = vpop.permute.xlu1 %340 }
 0x12a   : > { %v347_v63 = vsub.f32 %v341_v55, %v346_v58  ;;  %847 = vrcp.f32 %v510_v60  ;;  %v363_v7 = vpop.permute.xlu0 %362  ;;  %v520_v12 = vsub.f32 %v519_v57, %v510_v60 }
 0x12b   : > { %v369_v10 = vsub.f32 %v363_v7, %v368_v6 }
 0x12c   : > { %v348_v3 = vand.u32 2147483647, %v347_v63 }
 0x12d   : > { %v370_v15 = vand.u32 2147483647, %v369_v10 }
 0x12e   : > { %v352_v2 = vpop.permute.xlu1 %351  ;;  %v349_v8 = vadd.f32 %v348_v3, %v338_v4 }
 0x12f   : > { %v358_v5 = vsub.f32 %v352_v2, %v357_v62 }
 0x130   : > { %v846_v11 = vpop.eup %845 }
 0x131   : > { %v359_v9 = vand.u32 2147483647, %v358_v5  ;;  %v522_v17 = vmul.f32 %v846_v11, %v520_v12 }
 0x133   : > { %v360_v14 = vadd.f32 %v359_v9, %v349_v8 }
 0x134   : > { %v848_v13 = vpop.eup %847 }
 0x135   : > { %v512_v16 = vmul.f32 %v848_v13, %v500_v53  ;;  %v371_v18 = vadd.f32 %v370_v15, %v360_v14 }
 0x137   : > { %v523_v21 = vsub.f32 %v522_v17, %v512_v16 }
 0x18c   : > { %v454_v19 = vpop.f32.mrb[0].mxu0 }
 0x18d   : > { %v455_v20 = vadd.f32 %v454_v19, %v371_v18  ;;  %v722_v22 = vpop.f32.mrb[1].mxu0 }
 0x18e   : > { %v457_v23 = vpop.f32.mrb[2].mxu0 }
 0x18f   : > { %v524_v24 = vadd.f32 %v523_v21, %v455_v20  ;;  %v723_v25 = vpop.f32.mrb[3].mxu0 }
 0x191   : > { %525 = vst [vmem:[%s306_s23] sm:$0xff] %v524_v24 }
 0x192   : > { %978 = shalt.err (!%p975_p7)
}
 0x193   : > { %s979_s2 = scalar_lea.hbm %s1353_s6, 128  ;;  %s983_s10 = scalar_lea.hbm %s1406_s4, 256 }
 0x194   : > { %p980_p13 = scmp.ne.s32.totalorder %s1353_s6, %s979_s2  ;;  %p984_p2 = scmp.lt.u32.totalorder %s1353_s6, %s1406_s4 }
 0x195   : > { %p985_p11 = scmp.lt.u32.totalorder %s983_s10, %s979_s2  ;;  %p987_p1 = scmp.lt.u32.totalorder %s979_s2, %s1353_s6 }
 0x196   : > { %p981_p8 = pnand %p980_p13, %p1429_p6 }
 0x197   : > { %p986_p0 = por %p985_p11, %p984_p2 }
 0x198   : > { %p982_p12 = pneg %p981_p8 }
 0x199   : > { %p988_p10 = por %p987_p1, %p986_p0 }
 0x19b   : > { %p989_p3 = pnand %p988_p10, %p982_p12 }
 0x19d   : > { %992 = shalt.err (!%p989_p3)
}
 0x19e   : > { %736 = dma.vmem_to_hbm [thread:$0]  (%p1429_p6), %s1355_s30, 128, %s1353_s6, %s527_s18  }
 0x19f PF: > { %s553_s12 = sand.u32 1, %s1039_s15   ;;  %p1430_p4 = scmp.ne.s32.totalorder %s1414_s24, 0 }
 0x1a0   : > { %p1431_p9 = scmp.ge.s32.totalorder %s1059_s20, 2  ;;  %s554_s13 = scalar_lea.sflag [#allocation4], %s553_s12 }
 0x1a2   : > { %p753_p5 = pnand %p1431_p9, %p1430_p4 }
 0x1a4   : > { %1034 = dma.done.wait (!%p753_p5), %s554_s13, 128  }
 0x1a5   : > { %1036 = vsyncadd (!%p753_p5), %s554_s13, 4294967168  ;;  %s24_s20 = sadd.s32 1, %s1059_s20   ;;  %s1432_s15 = smov %s1043_s16 }
 0x1a6   : > { %p21_p7 = scmp.ge.s32.totalorder %s24_s20, 4   ;;  %s1433_s16 = smov %s1047_s17 }
 0x1a7   : > { %s1434_s17 = smov %s1247_s7  ;;  %s1435_s18 = smov %s1055_s19 }
 0x1a8   : > { %s1436_s19 = smov %s1438_s22  ;;  %23 = sbr.rel (!%p21_p7) target bundleno = 12 (0xc), region = 104 }
 0x1af   :  { %559 = vsyncpa [#allocation3], 1 }
 0x1b0   :  { %561 = vsyncpa [#allocation3 + $0x1], 1 }
 0x1b1   :  { %562 = vsyncpa [#allocation6], 1 }
 0x1b2   :  { %564 = vsyncpa [#allocation6 + $0x1], 1 }
 0x1b3   :  { %565 = vsyncpa [#allocation9], 1 }
 0x1b4   :  { %566 = vsyncpa [#allocation4], 1 }
 0x1b5   :  { %568 = vsyncpa [#allocation4 + $0x1], 1 }

</bundles_post_ra>
